<compile_context>
chip_gen: v7x
topology: tpu7x:2x2x1
jax: 0.10.0
libtpu: 0.0.40
codegen_flags: <defaults>
</compile_context>

<pallas_src>
import jax
import jax.numpy as jnp
import numpy as np
from jax import lax
from jax.experimental import pallas as pl
from jax.experimental.pallas import tpu as pltpu


_UNROLL_GROUP_LIMIT = 32  # trace-time unroll only for small group counts


def _pick_row_tile(s, cz, n_diag, budget_bytes=24 * 1024 * 1024):
    """Largest legal row tile whose double-buffered output block (+ resident
    table) fits the VMEM budget; prefers >= 2 tiles when s >= 16 (v7x 2-TC)."""
    row_bytes = s * cz * 4                    # one output row of the (s, s*cz) slab
    table_bytes = 2 * n_diag * cz * 4         # double-buffered diagonal table

    def fits(rt):
        return 2 * rt * row_bytes + table_bytes <= budget_bytes

    cands = sorted({s} | {d for d in range(8, s + 1, 8) if s % d == 0},
                   reverse=True)
    if s >= 16:
        for rt in cands:                      # prefer splitting across TCs
            if rt < s and fits(rt):
                return rt
    for rt in cands:
        if fits(rt):
            return rt
    # TODO(synk): for huge s*cz add a second (column) grid axis instead of
    # falling back to the smallest row tile.
    return min(cands)


def rel_pos_forward(wpT, bias, s, seq_len_full, *, row_tile=None):
    """pij = one_hot(RI[:s,:s], vbins) @ Wp.weight.T + bias via diagonal-table gather.

    wpT          : (vbins, cz) float32  -- transposed Linear weight (Wp.weight.T)
    bias         : (cz,)       float32  -- Linear bias
    s            : int, forward seq_len (static)
    seq_len_full : int, module seq_len (static)
    """
    wpT = jnp.asarray(wpT, jnp.float32)
    bias = jnp.asarray(bias, jnp.float32)

    vbins = 2 * (seq_len_full - 1) + 1
    cz = wpT.shape[1]
    assert wpT.shape == (vbins, cz)
    # torch.nn.functional.one_hot would raise on out-of-range indices; guard it.
    assert 1 <= s <= seq_len_full, "forward seq_len must be <= module seq_len"

    off = seq_len_full - 1          # RI offset
    n_diag = 2 * s - 1              # distinct RI values in the s x s slice

    # ---- Precompute the bias-folded, reversed diagonal table in plain JAX ----
    #   table[m] = wpT[off + (s-1) - m] + bias ,  m = 0 .. 2s-2
    # (reversed so every output column block is a contiguous ascending window).
    window = wpT[off - (s - 1): off + s]                  # (2s-1, cz), static slice
    table = jnp.flip(window, axis=0) + bias[None, :]      # (2s-1, cz)

    # ---- Tiling ----
    if row_tile is None:
        row_tile = _pick_row_tile(s, cz, n_diag)
    assert s % row_tile == 0
    assert row_tile == s or row_tile % 8 == 0
    num_tiles = s // row_tile

    # Lane packing: group adjacent column blocks so each store is 128 lanes wide.
    if cz < 128 and 128 % cz == 0:
        pack = min(s, 128 // cz)
    else:
        pack = 1
    n_groups = s // pack
    tail_start = n_groups * pack

    # VMEM limit sized to the chosen tile (fits v7x's 64 MiB physical VMEM).
    est_vmem = 2 * row_tile * s * cz * 4 + 2 * n_diag * cz * 4 + (2 << 20)
    vmem_limit = int(min(64 * 1024 * 1024, max(32 * 1024 * 1024, est_vmem)))

    def kernel(table_ref, o_ref):
        i0 = pl.multiple_of(pl.program_id(0) * row_tile, row_tile)
        base0 = (s - 1) + i0          # table row feeding output column j = 0

        # out[i, j*cz + c] = wpT[j - i + off, c] + bias[c] = table[(s-1-j) + i, c]
        def make_slab(j0, npack):
            parts = [table_ref[pl.ds(base0 - j0 - k, row_tile), :]
                     for k in range(npack)]
            return parts[0] if npack == 1 else jnp.concatenate(parts, axis=-1)

        if n_groups <= _UNROLL_GROUP_LIMIT:
            # Small s: fully unrolled, static column offsets, 128-lane stores.
            for g in range(n_groups):
                j0 = g * pack
                o_ref[:, j0 * cz:(j0 + pack) * cz] = make_slab(j0, pack)
        else:
            # Large s: bounded program size, still 128-lane stores per group.
            def body(g, carry):
                j0 = g * pack
                col = pl.multiple_of(j0 * cz, pack * cz)
                o_ref[:, pl.ds(col, pack * cz)] = make_slab(j0, pack)
                return carry
            lax.fori_loop(0, n_groups, body, 0, unroll=4)

        # Tail columns (only when pack does not divide s).
        for j0 in range(tail_start, s):
            o_ref[:, j0 * cz:(j0 + 1) * cz] = make_slab(j0, 1)

    out2d = pl.pallas_call(
        kernel,
        out_shape=jax.ShapeDtypeStruct((s, s * cz), jnp.float32),
        grid_spec=pltpu.PrefetchScalarGridSpec(
            num_scalar_prefetch=0,
            grid=(num_tiles,),
            in_specs=[
                # Constant index_map -> table DMA'd once, resident across steps.
                pl.BlockSpec((n_diag, cz), lambda g: (0, 0)),
            ],
            out_specs=pl.BlockSpec((row_tile, s * cz), lambda g: (g, 0)),
        ),
        compiler_params=pltpu.CompilerParams(
            dimension_semantics=("parallel",),
            vmem_limit_bytes=vmem_limit,
        ),
    )(table)

    # Free layout plumbing: (s, s*cz) -> (s, s, cz), same memory order as PyTorch.
    return out2d.reshape(s, s, cz)


def reference_forward(wpT, bias, s, seq_len_full):
    """Plain-JAX reference mirroring the PyTorch module."""
    vbins = 2 * (seq_len_full - 1) + 1
    a = jnp.arange(seq_len_full)
    RI = (a[None, :] - a[:, None]) + (seq_len_full - 1)
    RI = RI[:s, :s]
    oh = jax.nn.one_hot(RI, vbins, dtype=jnp.float32)
    return oh @ wpT + bias[None, None, :]


if __name__ == "__main__":
    # Small shapes consistent with the module: module seq_len = 16, cz = 32,
    # forward called with seq_len = 8.
    seq_len_full = 16
    cz = 32
    s = 8
    vbins = 2 * (seq_len_full - 1) + 1  # 31

    # Deterministic parameter init (mimics nn.Linear uniform(-1/sqrt(in), 1/sqrt(in))).
    key = jax.random.PRNGKey(0)
    kw, kb = jax.random.split(key)
    bound = 1.0 / np.sqrt(vbins)
    weight = jax.random.uniform(kw, (cz, vbins), jnp.float32, -bound, bound)  # Wp.weight
    bias = jax.random.uniform(kb, (cz,), jnp.float32, -bound, bound)          # Wp.bias

    wpT = jnp.asarray(weight.T)  # (vbins, cz)

    pij = rel_pos_forward(wpT, bias, s, seq_len_full)
    pij = jax.block_until_ready(pij)

    ref = reference_forward(wpT, bias, s, seq_len_full)
    assert pij.shape == (s, s, cz), pij.shape
    assert pij.dtype == jnp.float32
    np.testing.assert_allclose(np.asarray(pij), np.asarray(ref), rtol=1e-5, atol=1e-5)

    print("KERNEL_OK")
</pallas_src>

<mosaic_0001>
module attributes {stable_mosaic.version = 11 : i64} {
  func.func @kernel(%arg0: i32, %arg1: memref<15x32xf32, #tpu.memory_space<vmem>>, %arg2: memref<8x256xf32, #tpu.memory_space<vmem>>) attributes {dimension_semantics = [#tpu.dimension_semantics<parallel>], iteration_bounds = array<i64: 1>, scalar_prefetch = 0 : i64, scratch_operands = 0 : i64, tpu.core_type = #tpu.core_type<tc>, window_params = [{pipeline_mode = #tpu.pipeline_mode<synchronous>, transform_indices = @transform_0, window_bounds = array<i64: 15, 32>}, {transform_indices = @transform_1, window_bounds = array<i64: 8, 256>}]} {
    %c8_i32 = arith.constant 8 : i32
    %0 = arith.muli %arg0, %c8_i32 : i32
    %1 = tpu.assume_multiple %0, 8 : i32
    %c7_i32 = arith.constant 7 : i32
    %2 = arith.addi %c7_i32, %1 : i32
    %c0_i32 = arith.constant 0 : i32
    %3 = arith.subi %2, %c0_i32 : i32
    %c0_i32_0 = arith.constant 0 : i32
    %4 = arith.subi %3, %c0_i32_0 : i32
    %5 = arith.index_cast %4 : i32 to index
    %c0 = arith.constant 0 : index
    %6 = vector.load %arg1[%5, %c0] : memref<15x32xf32, #tpu.memory_space<vmem>>, vector<8x32xf32>
    %c0_i32_1 = arith.constant 0 : i32
    %7 = arith.subi %2, %c0_i32_1 : i32
    %c1_i32 = arith.constant 1 : i32
    %8 = arith.subi %7, %c1_i32 : i32
    %9 = arith.index_cast %8 : i32 to index
    %c0_2 = arith.constant 0 : index
    %10 = vector.load %arg1[%9, %c0_2] : memref<15x32xf32, #tpu.memory_space<vmem>>, vector<8x32xf32>
    %c0_i32_3 = arith.constant 0 : i32
    %11 = arith.subi %2, %c0_i32_3 : i32
    %c2_i32 = arith.constant 2 : i32
    %12 = arith.subi %11, %c2_i32 : i32
    %13 = arith.index_cast %12 : i32 to index
    %c0_4 = arith.constant 0 : index
    %14 = vector.load %arg1[%13, %c0_4] : memref<15x32xf32, #tpu.memory_space<vmem>>, vector<8x32xf32>
    %c0_i32_5 = arith.constant 0 : i32
    %15 = arith.subi %2, %c0_i32_5 : i32
    %c3_i32 = arith.constant 3 : i32
    %16 = arith.subi %15, %c3_i32 : i32
    %17 = arith.index_cast %16 : i32 to index
    %c0_6 = arith.constant 0 : index
    %18 = vector.load %arg1[%17, %c0_6] : memref<15x32xf32, #tpu.memory_space<vmem>>, vector<8x32xf32>
    %19 = tpu.concatenate %6, %10, %14, %18 in 1 : vector<8x32xf32>, vector<8x32xf32>, vector<8x32xf32>, vector<8x32xf32> -> vector<8x128xf32>
    %c0_7 = arith.constant 0 : index
    %c0_8 = arith.constant 0 : index
    %20 = vector.load %arg2[%c0_7, %c0_8] : memref<8x256xf32, #tpu.memory_space<vmem>>, vector<8x128xf32>
    tpu.vector_store %arg2[%c0_7, %c0_8], %19 {strides = array<i32>} : memref<8x256xf32, #tpu.memory_space<vmem>>, vector<8x128xf32>,
    %c4_i32 = arith.constant 4 : i32
    %21 = arith.subi %2, %c4_i32 : i32
    %c0_i32_9 = arith.constant 0 : i32
    %22 = arith.subi %21, %c0_i32_9 : i32
    %23 = arith.index_cast %22 : i32 to index
    %c0_10 = arith.constant 0 : index
    %24 = vector.load %arg1[%23, %c0_10] : memref<15x32xf32, #tpu.memory_space<vmem>>, vector<8x32xf32>
    %c4_i32_11 = arith.constant 4 : i32
    %25 = arith.subi %2, %c4_i32_11 : i32
    %c1_i32_12 = arith.constant 1 : i32
    %26 = arith.subi %25, %c1_i32_12 : i32
    %27 = arith.index_cast %26 : i32 to index
    %c0_13 = arith.constant 0 : index
    %28 = vector.load %arg1[%27, %c0_13] : memref<15x32xf32, #tpu.memory_space<vmem>>, vector<8x32xf32>
    %c4_i32_14 = arith.constant 4 : i32
    %29 = arith.subi %2, %c4_i32_14 : i32
    %c2_i32_15 = arith.constant 2 : i32
    %30 = arith.subi %29, %c2_i32_15 : i32
    %31 = arith.index_cast %30 : i32 to index
    %c0_16 = arith.constant 0 : index
    %32 = vector.load %arg1[%31, %c0_16] : memref<15x32xf32, #tpu.memory_space<vmem>>, vector<8x32xf32>
    %c4_i32_17 = arith.constant 4 : i32
    %33 = arith.subi %2, %c4_i32_17 : i32
    %c3_i32_18 = arith.constant 3 : i32
    %34 = arith.subi %33, %c3_i32_18 : i32
    %35 = arith.index_cast %34 : i32 to index
    %c0_19 = arith.constant 0 : index
    %36 = vector.load %arg1[%35, %c0_19] : memref<15x32xf32, #tpu.memory_space<vmem>>, vector<8x32xf32>
    %37 = tpu.concatenate %24, %28, %32, %36 in 1 : vector<8x32xf32>, vector<8x32xf32>, vector<8x32xf32>, vector<8x32xf32> -> vector<8x128xf32>
    %c0_20 = arith.constant 0 : index
    %c128 = arith.constant 128 : index
    %38 = vector.load %arg2[%c0_20, %c128] : memref<8x256xf32, #tpu.memory_space<vmem>>, vector<8x128xf32>
    tpu.vector_store %arg2[%c0_20, %c128], %37 {strides = array<i32>} : memref<8x256xf32, #tpu.memory_space<vmem>>, vector<8x128xf32>,
    return
  }
  func.func @transform_0(%arg0: i32) -> (i32, i32) {
    %c0_i32 = arith.constant 0 : i32
    %c0_i32_0 = arith.constant 0 : i32
    %c0_i32_1 = arith.constant 0 : i32
    return %c0_i32, %c0_i32_0 : i32, i32
  }
  func.func @transform_1(%arg0: i32) -> (i32, i32) {
    %c0_i32 = arith.constant 0 : i32
    %c0_i32_0 = arith.constant 0 : i32
    return %arg0, %c0_i32 : i32, i32
  }
}

</mosaic_0001>

<bundles_post_ra>
// kernel: tpu_custom_call.1
= control target key start
LH: loop header
LB: loop body
LE: loop exit
PB: predicated region body
PF: predicated region fallthrough
CT: control target
= control target key end

     0   :  { %6 = vsyncpa [#allocation3], 0  ;;  %s200_s0 = inlined_call_operand.hbm [shape: f32[15,32], index: 0, kind: input, shape index: {}]   ;;  %s201_s1 = inlined_call_operand.hbm [shape: f32[8,256], index: 1, kind: output, shape index: {}]  }
   0x1   :  { %7 = vsyncpa [#allocation4], 0  ;;  %s159_s6 = smov [#allocation2]   ;;  %s111_s10 = scalar_lea.hbm %s200_s0, 256 }
   0x2   :  { %s13_s7 = sshll.u32 %s159_s6, 4  ;;  %p112_p0 = scmp.ne.s32.totalorder %s200_s0, %s111_s10  ;;  %s14_s7 = int_to_ptr.vmem [resolvable:$true] %s13_s7 }
   0x3   :  { %p115_p1 = scmp.lt.u32.totalorder %s111_s10, %s200_s0 }
   0x5   :  { %p117_p2 = pnand %p115_p1, %p112_p0 }
   0x7   :  { %120 = shalt.err (!%p117_p2)
}
   0x8   :  { %s121_s15 = scalar_lea.vmem %s14_s7, 256  ;;  %p126_p4 = scmp.lt.s32.totalorder %s14_s7, %s14_s7 }
   0x9   :  { %p122_p3 = scmp.ne.s32.totalorder %s14_s7, %s121_s15  ;;  %p127_p5 = scmp.lt.s32.totalorder %s121_s15, %s121_s15 }
   0xb   :  { %p128_p6 = por %p127_p5, %p126_p4 }
   0xd   :  { %p129_p7 = pnand %p128_p6, %p122_p3 }
   0xf   :  { %132 = shalt.err (!%p129_p7)
}
  0x10   :  { %s160_s16 = smov 128   ;;  %s161_s17 = smov 8  }
  0x11   :  { %19 = dma.hbm_to_vmem [thread:$0]  %s200_s0, 256, %s14_s7, [#allocation3], %s160_s16, %s160_s16, %s161_s17  }
  0x12   :  { %155 = dma.done.wait [#allocation3], 256  }
  0x13   :  { %156 = vsyncadd [#allocation3], 4294967040  ;;  %v32_v0 = vld [vmem:[#allocation2 + $0x5] sm:$0xff]  ;;  %s162_s20 = smov 64   ;;  %s163_s21 = smov 32   ;;  %vm48_vm0 = vcmask 261120  }
  0x14   :  { %v29_v1 = vld [vmem:[#allocation2 + $0x6] sm:$0xff]  ;;  %41 = vrot.lane.b32.xlu1 %v32_v0, %s162_s20  ;;  %s164_s22 = smov 96   ;;  %vm50_vm1 = vcmask 523264   ;;  %s165_s0 = smov [#allocation5]   ;;  %vm52_vm2 = vcmask 785408  }
  0x15   :  { %37 = vrot.lane.b32.xlu0 %v29_v1, %s163_s21  ;;  %v63_v2 = vld [vmem:[#allocation2 + $0x1] sm:$0xff]  ;;  %s88_s23 = sshll.u32 %s165_s0, 4  ;;  %s89_s23 = int_to_ptr.vmem [resolvable:$true] %s88_s23 }
  0x16   :  { %v60_v3 = vld [vmem:[#allocation2 + $0x2] sm:$0xff]  ;;  %s133_s24 = scalar_lea.vmem %s89_s23, 256  ;;  %p138_p9 = scmp.lt.s32.totalorder %s89_s23, %s89_s23 }
  0x17   :  { %v65_v4 = vld [vmem:[#allocation2] sm:$0xff]  ;;  %p134_p8 = scmp.ne.s32.totalorder %s89_s23, %s133_s24  ;;  %p139_p10 = scmp.lt.s32.totalorder %s133_s24, %s133_s24 }
  0x18   :  { %71 = vrot.lane.b32.xlu1 %v63_v2, %s162_s20  ;;  %v35_v5 = vld [vmem:[#allocation2 + $0x4] sm:$0xff] }
  0x19   :  { %67 = vrot.lane.b32.xlu0 %v60_v3, %s163_s21  ;;  %v26_v8 = vld [vmem:[#allocation2 + $0x7] sm:$0xff]  ;;  %p140_p11 = por %p139_p10, %p138_p9 }
  0x1a   :  { %v57_v9 = vld [vmem:[#allocation2 + $0x3] sm:$0xff] }
  0x1b   :  { %p141_p12 = pnand %p140_p11, %p134_p8 }
  0x1c   :  { %75 = vrot.lane.b32.xlu1 %v65_v4, %s164_s22 }
  0x1d   :  { %45 = vrot.lane.b32.xlu0 %v35_v5, %s164_s22 }
  0x86   :  { %v42_v6 = vpop.permute.xlu1 %41 }
  0x87   :  { %v38_v7 = vpop.permute.xlu0 %37 }
  0x88   :  { %v49_v12 = vsel %vm48_vm0, %v26_v8, %v38_v7 }
  0x89   :  { %v51_v17 = vsel %vm50_vm1, %v49_v12, %v42_v6 }
  0x8a   :  { %v72_v10 = vpop.permute.xlu1 %71 }
  0x8b   :  { %v68_v11 = vpop.permute.xlu0 %67 }
  0x8c   :  { %v78_v13 = vsel %vm48_vm0, %v57_v9, %v68_v11 }
  0x8d   :  { %v79_v15 = vsel %vm50_vm1, %v78_v13, %v72_v10 }
  0x8e   :  { %v76_v14 = vpop.permute.xlu1 %75 }
  0x8f   :  { %v46_v16 = vpop.permute.xlu0 %45  ;;  %v80_v18 = vsel %vm52_vm2, %v79_v15, %v76_v14 }
  0x90   :  { %v53_v19 = vsel %vm52_vm2, %v51_v17, %v46_v16  ;;  %81 = vst [vmem:[#allocation5 + $0x8] sm:$0xff] %v80_v18 }
  0x91   :  { %54 = vst [vmem:[#allocation5] sm:$0xff] %v53_v19 }
  0x92   :  { %144 = shalt.err (!%p141_p12)
}
  0x93   :  { %s145_s27 = scalar_lea.hbm %s201_s1, 256 }
  0x94   :  { %p146_p13 = scmp.ne.s32.totalorder %s201_s1, %s145_s27  ;;  %p149_p0 = scmp.lt.u32.totalorder %s145_s27, %s201_s1 }
  0x96   :  { %p151_p1 = pnand %p149_p0, %p146_p13 }
  0x98   :  { %154 = shalt.err (!%p151_p1)
}
  0x99   :  { %91 = dma.vmem_to_hbm [thread:$0]  %s89_s23, 256, %s201_s1, [#allocation4]  }
  0x9a   :  { %157 = dma.done.wait [#allocation4], 256  }
  0x9b   :  { %158 = vsyncadd [#allocation4], 4294967040 }
  0x9c   :  { %95 = vsyncpa [#allocation3], 1 }
  0x9d   :  { %96 = vsyncpa [#allocation4], 1 }

</bundles_post_ra>
